<compile_context>
chip_gen: v5e
topology: v5e:2x2
jax: 0.10.0
libtpu: 0.0.40
codegen_flags: <defaults>
</compile_context>

<pallas_src>
import functools

import numpy as np
import jax
import jax.numpy as jnp
from jax import lax
from jax.experimental import pallas as pl
from jax.experimental.pallas import tpu as pltpu


# ----------------------------- Pallas kernel --------------------------------
def conv_tanh_kernel(x_ref, w_ref, b_ref, m_ref, o_ref, patch_ref, *,
                     H, W, KH, KW):
    """Fused im2col 3x3 'same' conv + bias + tanh for one clip (n_frame frames).

    x_ref:     (T, Cpad, P)         TSM-shifted input, P = H*W on the lane axis
    w_ref:     (Cout, KH*KW*Cpad)   weights, contraction-major
    b_ref:     (Cout, 1)            bias
    m_ref:     (KH*KW, P)           0/1 validity masks per tap ('same' halo)
    o_ref:     (T, Cout, P)         output (lane-dense, P = H*W)
    patch_ref: (T, KH*KW*Cpad, P)   VMEM scratch: im2col patch
    """
    T, Cpad, P = x_ref.shape

    x = x_ref[...]                       # (T, Cpad, P)
    masks = m_ref[...]                   # (KH*KW, P)

    # Build the im2col patch: for each tap (kh, kw) roll the flattened spatial
    # axis by dh*W + dw and zero positions that fall outside the 'same'
    # padding window.  Stores land at sublane-aligned offsets (multiples of
    # Cpad, Cpad % 8 == 0), so no relayout work is required.
    for kh in range(KH):
        for kw in range(KW):
            k = kh * KW + kw
            dh, dw = kh - KH // 2, kw - KW // 2
            off = dh * W + dw
            if off == 0:
                tap = x                  # centre tap: no shift, mask is all-ones
            else:
                tap = pltpu.roll(x, shift=(-off) % P, axis=2) * masks[k:k + 1, :]
            patch_ref[:, k * Cpad:(k + 1) * Cpad, :] = tap

    w = w_ref[...]                       # (Cout, KH*KW*Cpad)
    b = b_ref[...]                       # (Cout, 1)
    for t in range(T):                   # static unroll, T = n_frame
        # Single fused matmul per frame: contraction depth KH*KW*Cpad,
        # output (Cout, P) is already in the lane-dense store layout.
        acc = jnp.dot(w, patch_ref[t], preferred_element_type=jnp.float32)
        o_ref[t, :, :] = jnp.tanh(acc + b).astype(o_ref.dtype)


# ------------------------------- JAX glue ------------------------------------
def tsm_shift_flat(x_nchw, n_frame, fold_div, c_pad):
    """TSM channel shift (PyTorch semantics) fused with the flatten to
    (B, c_pad, H*W); pure data movement, one XLA pass."""
    B, C, H, W = x_nchw.shape
    xt = x_nchw.reshape(-1, n_frame, C, H * W)
    fold = C // fold_div
    # channels [0:fold]      : frame t <- frame t+1 (last frame -> 0)
    out1 = jnp.concatenate(
        [xt[:, 1:, :fold], jnp.zeros_like(xt[:, :1, :fold])], axis=1)
    # channels [fold:2*fold] : frame t <- frame t-1 (first frame -> 0)
    out2 = jnp.concatenate(
        [jnp.zeros_like(xt[:, :1, fold:2 * fold]), xt[:, :-1, fold:2 * fold]],
        axis=1)
    parts = [out1, out2, xt[:, :, 2 * fold:]]
    if c_pad > C:   # zero-pad channels up to a multiple of the 8-sublane tile
        parts.append(
            jnp.zeros((xt.shape[0], n_frame, c_pad - C, H * W), xt.dtype))
    out = jnp.concatenate(parts, axis=2)
    return out.reshape(B, c_pad, H * W)


@functools.partial(jax.jit, static_argnames=("n_frame", "fold_div"))
def temporal_shift_module_convolution(x_nchw, weight_hwio, bias, *, n_frame,
                                      fold_div=3):
    """Full forward pass: TSM -> conv2d(same) -> tanh.  NCHW in, NCHW out."""
    B, C, H, W = x_nchw.shape
    KH, KW, Cin, Cout = weight_hwio.shape
    assert Cin == C, "weight Cin must match input channels"
    assert B % n_frame == 0, "batch must be a multiple of n_frame"
    assert KH % 2 == 1 and KW % 2 == 1, "'same' halo logic assumes odd kernel"

    num_clips = B // n_frame
    P = H * W
    Cpad = ((C + 7) // 8) * 8            # align channels to the sublane tile
    K = KH * KW * Cpad

    # TSM shift + flatten + channel pad: one fused XLA pass, no transpose/pad
    # round-trips on the activation tensor.
    x_flat = tsm_shift_flat(x_nchw, n_frame, fold_div, Cpad)     # (B, Cpad, P)

    # Weights -> (Cout, KH*KW*Cpad), zero-padded on the Cin axis.
    w_pad = jnp.zeros((KH, KW, Cpad, Cout), weight_hwio.dtype)
    w_pad = w_pad.at[:, :, :C, :].set(weight_hwio)
    w_t = w_pad.reshape(K, Cout).T                               # (Cout, K)
    b_col = bias.reshape(Cout, 1)

    # 0/1 'same'-padding validity masks per tap (trace-time numpy constants).
    hh, ww = np.meshgrid(np.arange(H), np.arange(W), indexing="ij")
    masks_np = np.stack(
        [((hh + (kh - KH // 2) >= 0) & (hh + (kh - KH // 2) < H) &
          (ww + (kw - KW // 2) >= 0) & (ww + (kw - KW // 2) < W)).reshape(-1)
         for kh in range(KH) for kw in range(KW)],
        axis=0).astype(np.float32)
    masks = jnp.asarray(masks_np)                                # (KH*KW, P)

    kernel = functools.partial(conv_tanh_kernel, H=H, W=W, KH=KH, KW=KW)

    # NOTE: at realistic TSM sizes (56-224 spatial, 64-512 channels) the
    # whole-frame block should be split into H-row strips with a 2-row halo to
    # respect v7x's 64 MiB VMEM; at these shapes a full clip per step is tiny.
    out_flat = pl.pallas_call(
        kernel,
        out_shape=jax.ShapeDtypeStruct((B, Cout, P), x_nchw.dtype),
        grid_spec=pltpu.PrefetchScalarGridSpec(
            num_scalar_prefetch=0,
            grid=(num_clips,),
            in_specs=[
                pl.BlockSpec((n_frame, Cpad, P), lambda c: (c, 0, 0)),
                pl.BlockSpec((Cout, K), lambda c: (0, 0)),
                pl.BlockSpec((Cout, 1), lambda c: (0, 0)),
                pl.BlockSpec((KH * KW, P), lambda c: (0, 0)),
            ],
            out_specs=pl.BlockSpec((n_frame, Cout, P), lambda c: (c, 0, 0)),
            scratch_shapes=[pltpu.VMEM((n_frame, K, P), jnp.float32)],
        ),
        compiler_params=pltpu.CompilerParams(
            dimension_semantics=("parallel",),
            vmem_limit_bytes=32 * 1024 * 1024,
        ),
    )(x_flat, w_t, b_col, masks)

    # (B, Cout, H*W) -> (B, Cout, H, W): plain reshape, no transpose.
    return out_flat.reshape(B, Cout, H, W)


# --------------------------- reference (for checking) ------------------------
def reference_tsm_shift(x_nchw, n_frame, fold_div=3):
    B, C, H, W = x_nchw.shape
    xt = x_nchw.reshape(-1, n_frame, C, H, W)
    fold = C // fold_div
    out1 = jnp.concatenate(
        [xt[:, 1:, :fold], jnp.zeros_like(xt[:, :1, :fold])], axis=1)
    out2 = jnp.concatenate(
        [jnp.zeros_like(xt[:, :1, fold:2 * fold]), xt[:, :-1, fold:2 * fold]],
        axis=1)
    out3 = xt[:, :, 2 * fold:]
    out = jnp.concatenate([out1, out2, out3], axis=2)
    return out.reshape(-1, C, H, W)


def reference_forward(x_nchw, weight_hwio, bias, n_frame, fold_div=3):
    xs = reference_tsm_shift(x_nchw, n_frame, fold_div)
    x_nhwc = jnp.transpose(xs, (0, 2, 3, 1))
    out = lax.conv_general_dilated(
        x_nhwc, weight_hwio, window_strides=(1, 1), padding="SAME",
        dimension_numbers=("NHWC", "HWIO", "NHWC"))
    out = jnp.tanh(out + bias[None, None, None, :])
    return jnp.transpose(out, (0, 3, 1, 2))


# ----------------------------------- main -------------------------------------
if __name__ == "__main__":
    n_frame = 4
    num_clips = 2
    B = num_clips * n_frame          # batch must be a multiple of n_frame
    C_in, C_out = 4, 8
    H = W = 16
    KH = KW = 3

    key = jax.random.PRNGKey(0)
    kx, kw_key, kb_key = jax.random.split(key, 3)

    x = jax.random.normal(kx, (B, C_in, H, W), dtype=jnp.float32)
    # Conv2d weight in HWIO layout (== torch weight.permute(2, 3, 1, 0)).
    weight = 0.1 * jax.random.normal(kw_key, (KH, KW, C_in, C_out),
                                     dtype=jnp.float32)
    bias = 0.1 * jax.random.normal(kb_key, (C_out,), dtype=jnp.float32)

    out = temporal_shift_module_convolution(x, weight, bias, n_frame=n_frame)
    out = jax.block_until_ready(out)

    ref = reference_forward(x, weight, bias, n_frame)
    assert out.shape == (B, C_out, H, W)
    max_err = float(jnp.max(jnp.abs(out - ref)))
    assert jnp.allclose(out, ref, atol=1e-5, rtol=1e-5), (
        f"Pallas kernel output mismatch vs reference, max|err|={max_err}")

    print("KERNEL_OK")
</pallas_src>

<mosaic_0001>
module attributes {stable_mosaic.version = 11 : i64} {
  func.func @conv_tanh_kernel(%arg0: i32, %arg1: memref<4x8x256xf32, #tpu.memory_space<vmem>>, %arg2: memref<8x72xf32, #tpu.memory_space<vmem>>, %arg3: memref<8x1xf32, #tpu.memory_space<vmem>>, %arg4: memref<9x256xf32, #tpu.memory_space<vmem>>, %arg5: memref<4x8x256xf32, #tpu.memory_space<vmem>>, %arg6: memref<4x72x256xf32, #tpu.memory_space<vmem>>) attributes {dimension_semantics = [#tpu.dimension_semantics<parallel>], iteration_bounds = array<i64: 2>, scalar_prefetch = 0 : i64, scratch_operands = 1 : i64, tpu.core_type = #tpu.core_type<tc>, window_params = [{transform_indices = @transform_0, window_bounds = array<i64: 4, 8, 256>}, {pipeline_mode = #tpu.pipeline_mode<synchronous>, transform_indices = @transform_1, window_bounds = array<i64: 8, 72>}, {pipeline_mode = #tpu.pipeline_mode<synchronous>, transform_indices = @transform_2, window_bounds = array<i64: 8, 1>}, {pipeline_mode = #tpu.pipeline_mode<synchronous>, transform_indices = @transform_3, window_bounds = array<i64: 9, 256>}, {transform_indices = @transform_4, window_bounds = array<i64: 4, 8, 256>}]} {
    %c0 = arith.constant 0 : index
    %c0_0 = arith.constant 0 : index
    %c0_1 = arith.constant 0 : index
    %0 = vector.load %arg1[%c0, %c0_0, %c0_1] : memref<4x8x256xf32, #tpu.memory_space<vmem>>, vector<4x8x256xf32>
    %c0_2 = arith.constant 0 : index
    %c0_3 = arith.constant 0 : index
    %1 = vector.load %arg4[%c0_2, %c0_3] : memref<9x256xf32, #tpu.memory_space<vmem>>, vector<9x256xf32>
    %c17_i32 = arith.constant 17 : i32
    %2 = tpu.dynamic_rotate %0 by %c17_i32 dim 2 : vector<4x8x256xf32>, i32 -> vector<4x8x256xf32>
    %3 = vector.extract_strided_slice %1 {offsets = [0, 0], sizes = [1, 256], strides = [1, 1]} : vector<9x256xf32> to vector<1x256xf32>
    %4 = vector.shape_cast %3 : vector<1x256xf32> to vector<1x1x256xf32>
    %5 = vector.broadcast %4 : vector<1x1x256xf32> to vector<4x8x256xf32>
    %6 = arith.mulf %2, %5 : vector<4x8x256xf32>
    %c0_4 = arith.constant 0 : index
    %c0_5 = arith.constant 0 : index
    %c0_6 = arith.constant 0 : index
    %7 = vector.load %arg6[%c0_4, %c0_5, %c0_6] : memref<4x72x256xf32, #tpu.memory_space<vmem>>, vector<4x8x256xf32>
    tpu.vector_store %arg6[%c0_4, %c0_5, %c0_6], %6 {strides = array<i32>} : memref<4x72x256xf32, #tpu.memory_space<vmem>>, vector<4x8x256xf32>,
    %c16_i32 = arith.constant 16 : i32
    %8 = tpu.dynamic_rotate %0 by %c16_i32 dim 2 : vector<4x8x256xf32>, i32 -> vector<4x8x256xf32>
    %9 = vector.extract_strided_slice %1 {offsets = [1, 0], sizes = [1, 256], strides = [1, 1]} : vector<9x256xf32> to vector<1x256xf32>
    %10 = vector.shape_cast %9 : vector<1x256xf32> to vector<1x1x256xf32>
    %11 = vector.broadcast %10 : vector<1x1x256xf32> to vector<4x8x256xf32>
    %12 = arith.mulf %8, %11 : vector<4x8x256xf32>
    %c0_7 = arith.constant 0 : index
    %c8 = arith.constant 8 : index
    %c0_8 = arith.constant 0 : index
    %13 = vector.load %arg6[%c0_7, %c8, %c0_8] : memref<4x72x256xf32, #tpu.memory_space<vmem>>, vector<4x8x256xf32>
    tpu.vector_store %arg6[%c0_7, %c8, %c0_8], %12 {strides = array<i32>} : memref<4x72x256xf32, #tpu.memory_space<vmem>>, vector<4x8x256xf32>,
    %c15_i32 = arith.constant 15 : i32
    %14 = tpu.dynamic_rotate %0 by %c15_i32 dim 2 : vector<4x8x256xf32>, i32 -> vector<4x8x256xf32>
    %15 = vector.extract_strided_slice %1 {offsets = [2, 0], sizes = [1, 256], strides = [1, 1]} : vector<9x256xf32> to vector<1x256xf32>
    %16 = vector.shape_cast %15 : vector<1x256xf32> to vector<1x1x256xf32>
    %17 = vector.broadcast %16 : vector<1x1x256xf32> to vector<4x8x256xf32>
    %18 = arith.mulf %14, %17 : vector<4x8x256xf32>
    %c0_9 = arith.constant 0 : index
    %c16 = arith.constant 16 : index
    %c0_10 = arith.constant 0 : index
    %19 = vector.load %arg6[%c0_9, %c16, %c0_10] : memref<4x72x256xf32, #tpu.memory_space<vmem>>, vector<4x8x256xf32>
    tpu.vector_store %arg6[%c0_9, %c16, %c0_10], %18 {strides = array<i32>} : memref<4x72x256xf32, #tpu.memory_space<vmem>>, vector<4x8x256xf32>,
    %c1_i32 = arith.constant 1 : i32
    %20 = tpu.dynamic_rotate %0 by %c1_i32 dim 2 : vector<4x8x256xf32>, i32 -> vector<4x8x256xf32>
    %21 = vector.extract_strided_slice %1 {offsets = [3, 0], sizes = [1, 256], strides = [1, 1]} : vector<9x256xf32> to vector<1x256xf32>
    %22 = vector.shape_cast %21 : vector<1x256xf32> to vector<1x1x256xf32>
    %23 = vector.broadcast %22 : vector<1x1x256xf32> to vector<4x8x256xf32>
    %24 = arith.mulf %20, %23 : vector<4x8x256xf32>
    %c0_11 = arith.constant 0 : index
    %c24 = arith.constant 24 : index
    %c0_12 = arith.constant 0 : index
    %25 = vector.load %arg6[%c0_11, %c24, %c0_12] : memref<4x72x256xf32, #tpu.memory_space<vmem>>, vector<4x8x256xf32>
    tpu.vector_store %arg6[%c0_11, %c24, %c0_12], %24 {strides = array<i32>} : memref<4x72x256xf32, #tpu.memory_space<vmem>>, vector<4x8x256xf32>,
    %c0_13 = arith.constant 0 : index
    %c32 = arith.constant 32 : index
    %c0_14 = arith.constant 0 : index
    %26 = vector.load %arg6[%c0_13, %c32, %c0_14] : memref<4x72x256xf32, #tpu.memory_space<vmem>>, vector<4x8x256xf32>
    tpu.vector_store %arg6[%c0_13, %c32, %c0_14], %0 {strides = array<i32>} : memref<4x72x256xf32, #tpu.memory_space<vmem>>, vector<4x8x256xf32>,
    %c255_i32 = arith.constant 255 : i32
    %27 = tpu.dynamic_rotate %0 by %c255_i32 dim 2 : vector<4x8x256xf32>, i32 -> vector<4x8x256xf32>
    %28 = vector.extract_strided_slice %1 {offsets = [5, 0], sizes = [1, 256], strides = [1, 1]} : vector<9x256xf32> to vector<1x256xf32>
    %29 = vector.shape_cast %28 : vector<1x256xf32> to vector<1x1x256xf32>
    %30 = vector.broadcast %29 : vector<1x1x256xf32> to vector<4x8x256xf32>
    %31 = arith.mulf %27, %30 : vector<4x8x256xf32>
    %c0_15 = arith.constant 0 : index
    %c40 = arith.constant 40 : index
    %c0_16 = arith.constant 0 : index
    %32 = vector.load %arg6[%c0_15, %c40, %c0_16] : memref<4x72x256xf32, #tpu.memory_space<vmem>>, vector<4x8x256xf32>
    tpu.vector_store %arg6[%c0_15, %c40, %c0_16], %31 {strides = array<i32>} : memref<4x72x256xf32, #tpu.memory_space<vmem>>, vector<4x8x256xf32>,
    %c241_i32 = arith.constant 241 : i32
    %33 = tpu.dynamic_rotate %0 by %c241_i32 dim 2 : vector<4x8x256xf32>, i32 -> vector<4x8x256xf32>
    %34 = vector.extract_strided_slice %1 {offsets = [6, 0], sizes = [1, 256], strides = [1, 1]} : vector<9x256xf32> to vector<1x256xf32>
    %35 = vector.shape_cast %34 : vector<1x256xf32> to vector<1x1x256xf32>
    %36 = vector.broadcast %35 : vector<1x1x256xf32> to vector<4x8x256xf32>
    %37 = arith.mulf %33, %36 : vector<4x8x256xf32>
    %c0_17 = arith.constant 0 : index
    %c48 = arith.constant 48 : index
    %c0_18 = arith.constant 0 : index
    %38 = vector.load %arg6[%c0_17, %c48, %c0_18] : memref<4x72x256xf32, #tpu.memory_space<vmem>>, vector<4x8x256xf32>
    tpu.vector_store %arg6[%c0_17, %c48, %c0_18], %37 {strides = array<i32>} : memref<4x72x256xf32, #tpu.memory_space<vmem>>, vector<4x8x256xf32>,
    %c240_i32 = arith.constant 240 : i32
    %39 = tpu.dynamic_rotate %0 by %c240_i32 dim 2 : vector<4x8x256xf32>, i32 -> vector<4x8x256xf32>
    %40 = vector.extract_strided_slice %1 {offsets = [7, 0], sizes = [1, 256], strides = [1, 1]} : vector<9x256xf32> to vector<1x256xf32>
    %41 = vector.shape_cast %40 : vector<1x256xf32> to vector<1x1x256xf32>
    %42 = vector.broadcast %41 : vector<1x1x256xf32> to vector<4x8x256xf32>
    %43 = arith.mulf %39, %42 : vector<4x8x256xf32>
    %c0_19 = arith.constant 0 : index
    %c56 = arith.constant 56 : index
    %c0_20 = arith.constant 0 : index
    %44 = vector.load %arg6[%c0_19, %c56, %c0_20] : memref<4x72x256xf32, #tpu.memory_space<vmem>>, vector<4x8x256xf32>
    tpu.vector_store %arg6[%c0_19, %c56, %c0_20], %43 {strides = array<i32>} : memref<4x72x256xf32, #tpu.memory_space<vmem>>, vector<4x8x256xf32>,
    %c239_i32 = arith.constant 239 : i32
    %45 = tpu.dynamic_rotate %0 by %c239_i32 dim 2 : vector<4x8x256xf32>, i32 -> vector<4x8x256xf32>
    %46 = vector.extract_strided_slice %1 {offsets = [8, 0], sizes = [1, 256], strides = [1, 1]} : vector<9x256xf32> to vector<1x256xf32>
    %47 = vector.shape_cast %46 : vector<1x256xf32> to vector<1x1x256xf32>
    %48 = vector.broadcast %47 : vector<1x1x256xf32> to vector<4x8x256xf32>
    %49 = arith.mulf %45, %48 : vector<4x8x256xf32>
    %c0_21 = arith.constant 0 : index
    %c64 = arith.constant 64 : index
    %c0_22 = arith.constant 0 : index
    %50 = vector.load %arg6[%c0_21, %c64, %c0_22] : memref<4x72x256xf32, #tpu.memory_space<vmem>>, vector<4x8x256xf32>
    tpu.vector_store %arg6[%c0_21, %c64, %c0_22], %49 {strides = array<i32>} : memref<4x72x256xf32, #tpu.memory_space<vmem>>, vector<4x8x256xf32>,
    %c0_23 = arith.constant 0 : index
    %c0_24 = arith.constant 0 : index
    %51 = vector.load %arg2[%c0_23, %c0_24] : memref<8x72xf32, #tpu.memory_space<vmem>>, vector<8x72xf32>
    %c0_25 = arith.constant 0 : index
    %c0_26 = arith.constant 0 : index
    %52 = vector.load %arg3[%c0_25, %c0_26] : memref<8x1xf32, #tpu.memory_space<vmem>>, vector<8x1xf32>
    %c0_27 = arith.constant 0 : index
    %c0_28 = arith.constant 0 : index
    %c0_29 = arith.constant 0 : index
    %53 = vector.load %arg6[%c0_27, %c0_28, %c0_29] : memref<4x72x256xf32, #tpu.memory_space<vmem>>, vector<1x72x256xf32>
    %54 = vector.shape_cast %53 : vector<1x72x256xf32> to vector<72x256xf32>
    %cst = arith.constant dense<0.000000e+00> : vector<8x256xf32>
    %55 = tpu.matmul %51, %54, %cst {dimension_numbers = #tpu.dot_dimension_numbers<[1], [0], [0], [1], [0, 0, 1, 1], [], []>} : vector<8x72xf32>, vector<72x256xf32>, vector<8x256xf32> -> vector<8x256xf32>
    %56 = vector.broadcast %52 : vector<8x1xf32> to vector<8x256xf32>
    %57 = arith.addf %55, %56 : vector<8x256xf32>
    %58 = math.tanh %57 : vector<8x256xf32>
    %c0_30 = arith.constant 0 : index
    %c0_31 = arith.constant 0 : index
    %c0_32 = arith.constant 0 : index
    %59 = vector.load %arg5[%c0_30, %c0_31, %c0_32] : memref<4x8x256xf32, #tpu.memory_space<vmem>>, vector<1x8x256xf32>
    %60 = vector.shape_cast %59 : vector<1x8x256xf32> to vector<8x256xf32>
    %61 = vector.shape_cast %58 : vector<8x256xf32> to vector<1x8x256xf32>
    tpu.vector_store %arg5[%c0_30, %c0_31, %c0_32], %61 {strides = array<i32>} : memref<4x8x256xf32, #tpu.memory_space<vmem>>, vector<1x8x256xf32>,
    %c1 = arith.constant 1 : index
    %c0_33 = arith.constant 0 : index
    %c0_34 = arith.constant 0 : index
    %62 = vector.load %arg6[%c1, %c0_33, %c0_34] : memref<4x72x256xf32, #tpu.memory_space<vmem>>, vector<1x72x256xf32>
    %63 = vector.shape_cast %62 : vector<1x72x256xf32> to vector<72x256xf32>
    %cst_35 = arith.constant dense<0.000000e+00> : vector<8x256xf32>
    %64 = tpu.matmul %51, %63, %cst_35 {dimension_numbers = #tpu.dot_dimension_numbers<[1], [0], [0], [1], [0, 0, 1, 1], [], []>} : vector<8x72xf32>, vector<72x256xf32>, vector<8x256xf32> -> vector<8x256xf32>
    %65 = vector.broadcast %52 : vector<8x1xf32> to vector<8x256xf32>
    %66 = arith.addf %64, %65 : vector<8x256xf32>
    %67 = math.tanh %66 : vector<8x256xf32>
    %c1_36 = arith.constant 1 : index
    %c0_37 = arith.constant 0 : index
    %c0_38 = arith.constant 0 : index
    %68 = vector.load %arg5[%c1_36, %c0_37, %c0_38] : memref<4x8x256xf32, #tpu.memory_space<vmem>>, vector<1x8x256xf32>
    %69 = vector.shape_cast %68 : vector<1x8x256xf32> to vector<8x256xf32>
    %70 = vector.shape_cast %67 : vector<8x256xf32> to vector<1x8x256xf32>
    tpu.vector_store %arg5[%c1_36, %c0_37, %c0_38], %70 {strides = array<i32>} : memref<4x8x256xf32, #tpu.memory_space<vmem>>, vector<1x8x256xf32>,
    %c2 = arith.constant 2 : index
    %c0_39 = arith.constant 0 : index
    %c0_40 = arith.constant 0 : index
    %71 = vector.load %arg6[%c2, %c0_39, %c0_40] : memref<4x72x256xf32, #tpu.memory_space<vmem>>, vector<1x72x256xf32>
    %72 = vector.shape_cast %71 : vector<1x72x256xf32> to vector<72x256xf32>
    %cst_41 = arith.constant dense<0.000000e+00> : vector<8x256xf32>
    %73 = tpu.matmul %51, %72, %cst_41 {dimension_numbers = #tpu.dot_dimension_numbers<[1], [0], [0], [1], [0, 0, 1, 1], [], []>} : vector<8x72xf32>, vector<72x256xf32>, vector<8x256xf32> -> vector<8x256xf32>
    %74 = vector.broadcast %52 : vector<8x1xf32> to vector<8x256xf32>
    %75 = arith.addf %73, %74 : vector<8x256xf32>
    %76 = math.tanh %75 : vector<8x256xf32>
    %c2_42 = arith.constant 2 : index
    %c0_43 = arith.constant 0 : index
    %c0_44 = arith.constant 0 : index
    %77 = vector.load %arg5[%c2_42, %c0_43, %c0_44] : memref<4x8x256xf32, #tpu.memory_space<vmem>>, vector<1x8x256xf32>
    %78 = vector.shape_cast %77 : vector<1x8x256xf32> to vector<8x256xf32>
    %79 = vector.shape_cast %76 : vector<8x256xf32> to vector<1x8x256xf32>
    tpu.vector_store %arg5[%c2_42, %c0_43, %c0_44], %79 {strides = array<i32>} : memref<4x8x256xf32, #tpu.memory_space<vmem>>, vector<1x8x256xf32>,
    %c3 = arith.constant 3 : index
    %c0_45 = arith.constant 0 : index
    %c0_46 = arith.constant 0 : index
    %80 = vector.load %arg6[%c3, %c0_45, %c0_46] : memref<4x72x256xf32, #tpu.memory_space<vmem>>, vector<1x72x256xf32>
    %81 = vector.shape_cast %80 : vector<1x72x256xf32> to vector<72x256xf32>
    %cst_47 = arith.constant dense<0.000000e+00> : vector<8x256xf32>
    %82 = tpu.matmul %51, %81, %cst_47 {dimension_numbers = #tpu.dot_dimension_numbers<[1], [0], [0], [1], [0, 0, 1, 1], [], []>} : vector<8x72xf32>, vector<72x256xf32>, vector<8x256xf32> -> vector<8x256xf32>
    %83 = vector.broadcast %52 : vector<8x1xf32> to vector<8x256xf32>
    %84 = arith.addf %82, %83 : vector<8x256xf32>
    %85 = math.tanh %84 : vector<8x256xf32>
    %c3_48 = arith.constant 3 : index
    %c0_49 = arith.constant 0 : index
    %c0_50 = arith.constant 0 : index
    %86 = vector.load %arg5[%c3_48, %c0_49, %c0_50] : memref<4x8x256xf32, #tpu.memory_space<vmem>>, vector<1x8x256xf32>
    %87 = vector.shape_cast %86 : vector<1x8x256xf32> to vector<8x256xf32>
    %88 = vector.shape_cast %85 : vector<8x256xf32> to vector<1x8x256xf32>
    tpu.vector_store %arg5[%c3_48, %c0_49, %c0_50], %88 {strides = array<i32>} : memref<4x8x256xf32, #tpu.memory_space<vmem>>, vector<1x8x256xf32>,
    return
  }
  func.func @transform_0(%arg0: i32) -> (i32, i32, i32) {
    %c0_i32 = arith.constant 0 : i32
    %c0_i32_0 = arith.constant 0 : i32
    %c0_i32_1 = arith.constant 0 : i32
    return %arg0, %c0_i32, %c0_i32_0 : i32, i32, i32
  }
  func.func @transform_1(%arg0: i32) -> (i32, i32) {
    %c0_i32 = arith.constant 0 : i32
    %c0_i32_0 = arith.constant 0 : i32
    %c0_i32_1 = arith.constant 0 : i32
    return %c0_i32, %c0_i32_0 : i32, i32
  }
  func.func @transform_2(%arg0: i32) -> (i32, i32) {
    %c0_i32 = arith.constant 0 : i32
    %c0_i32_0 = arith.constant 0 : i32
    %c0_i32_1 = arith.constant 0 : i32
    return %c0_i32, %c0_i32_0 : i32, i32
  }
  func.func @transform_3(%arg0: i32) -> (i32, i32) {
    %c0_i32 = arith.constant 0 : i32
    %c0_i32_0 = arith.constant 0 : i32
    %c0_i32_1 = arith.constant 0 : i32
    return %c0_i32, %c0_i32_0 : i32, i32
  }
  func.func @transform_4(%arg0: i32) -> (i32, i32, i32) {
    %c0_i32 = arith.constant 0 : i32
    %c0_i32_0 = arith.constant 0 : i32
    %c0_i32_1 = arith.constant 0 : i32
    return %arg0, %c0_i32, %c0_i32_0 : i32, i32, i32
  }
}

</mosaic_0001>

<bundles_post_ra>
// kernel: temporal_shift_module_convolution.1
= control target key start
LH: loop header
LB: loop body
LE: loop exit
PB: predicated region body
PF: predicated region fallthrough
CT: control target
= control target key end

     0   :  { %s1003_s15 = smov 0   ;;  %s1517_s0 = inlined_call_operand.vmem [shape: f32[8,8,256], index: 0, kind: input, shape index: {}]   ;;  %s1518_s1 = inlined_call_operand.vmem [shape: f32[8,72], index: 1, kind: input, shape index: {}]   ;;  %s1519_s2 = inlined_call_operand.vmem [shape: f32[8,1], index: 2, kind: input, shape index: {}]   ;;  %s1520_s3 = inlined_call_operand.vmem [shape: f32[9,256], index: 3, kind: input, shape index: {}]   ;;  %s1521_s4 = inlined_call_operand.vmem [shape: f32[8,8,256], index: 4, kind: output, shape index: {}]  }
   0x1 LB: > { %s895_s16 = sadd.s32 4294967295, %s967_s15   ;;  %p899_p0 = scmp.ge.s32.totalorder %s967_s15, 1  ;;  %s967_s15 = sphi %s1003_s15, %s14_s15  }
   0x2   : > { %p164_p1 = scmp.lt.s32.totalorder %s967_s15, 3 }
   0x4   : > { %p165_p2 = pnand %p899_p0, %p164_p1 }
   0x5   : > { %s900_s17 = sshll.u32 (!%p165_p2), %s895_s16, 2  ;;  %s969_s22 = smov (!%p165_p2), 112  }
   0x6   : > { %168 = sbr.rel (%p165_p2) target bundleno = 441 (0x1b9), region = 36  ;;  %p193_p3 = scmp.lt.s32.totalorder (!%p165_p2), %s900_s17, 7 }
   0x7   : > { %s970_s23 = smov (!%p165_p2), 111   ;;  %s971_s24 = smov (!%p165_p2), 113  }
   0x8   : > { %s972_s25 = smov (!%p165_p2), 127   ;;  %s973_s26 = smov (!%p165_p2), 1  }
   0x9   : > { %s974_s27 = smov (!%p165_p2), 15   ;;  %s975_s28 = smov (!%p165_p2), 16  }
   0xa   : > { %s976_s29 = smov (!%p165_p2), 17  }
   0xb   : > { %s1523_s17 = smov (!%p193_p3, %s900_s17), 7  ;;  %v234_v11 = vlaneseq  ;;  %v1142_v16 = vld [vmem:[%s1520_s3] sm:$0xff]  ;;  %v1147_v17 = vld [vmem:[%s1520_s3 + $0x8] sm:$0xff]  ;;  %v1158_v18 = vld [vmem:[%s1520_s3 + $0x10] ss:$0 sm:$0xff]  ;;  %vm597_vm8 = vcmask 588800  }
   0xc   : > { %s922_s18 = sshll.u32 %s1523_s17, 4  ;;  %v1163_v19 = vld [vmem:[%s1520_s3 + $0x18] ss:$0 sm:$0xff]  ;;  %v1169_v22 = vperm.slane %v1142_v16, 7  ;;  %v1172_v23 = vperm.slane %v1147_v17, 7  ;;  %v1187_v31 = vperm.slane %v1142_v16, 6 }
   0xd   : > { %s1019_s21 = scalar_lea.vmem %s1517_s0, %s922_s18  ;;  %v1137_v15 = vand.u32 127, %v234_v11  ;;  %v1190_v32 = vperm.slane %v1147_v17, 6  ;;  %v1214_v46 = vperm.slane %v1142_v16, 5  ;;  %v1217_v47 = vperm.slane %v1147_v17, 5 }
   0xe   : > { %v1022_v0 = vld [vmem:[%s1019_s21 + $0x10] sm:$0xff]  ;;  %v1031_v1 = vld [vmem:[%s1019_s21 + $0x18] sm:$0xff]  ;;  %v1040_v2 = vld [vmem:[%s1019_s21 + $0x8] sm:$0xff] }
   0xf   : > { %488 = vrot.lane.b32.xlu1 %v1022_v0, %s969_s22  ;;  %531 = vrot.lane.b32.xlu0 %v1022_v0, %s970_s23  ;;  %v1043_v3 = vld [vmem:[%s1019_s21] sm:$0xff]  ;;  %v1058_v4 = vld [vmem:[%s1019_s21 + $0x38] sm:$0xff]  ;;  %vm502_vm0 = vcmp.lt.s32.totalorder %v1137_v15, 112  ;;  %vm545_vm1 = vcmp.lt.s32.totalorder %v1137_v15, 111  ;;  %vm459_vm2 = vcmp.lt.s32.totalorder %v1137_v15, 113  ;;  %vm416_vm3 = vcmp.lt.s32.totalorder %v1137_v15, 127 }
  0x10   : > { %445 = vrot.lane.b32.xlu2 %v1022_v0, %s971_s24  ;;  %v1061_v5 = vld [vmem:[%s1019_s21 + $0x30] sm:$0xff]  ;;  %v1092_v6 = vld [vmem:[%s1019_s21 + $0x20] sm:$0xff]  ;;  %v1097_v7 = vld [vmem:[%s1019_s21 + $0x28] sm:$0xff]  ;;  %vm365_vm4 = vcmp.lt.s32.totalorder %v1137_v15, 1  ;;  %vm322_vm5 = vcmp.lt.s32.totalorder %v1137_v15, 15  ;;  %vm279_vm6 = vcmp.lt.s32.totalorder %v1137_v15, 16  ;;  %s204_s21 = scalar_lea.vmem %s1521_s4, %s922_s18 }
  0x11   : > { %vm236_vm7 = vcmp.lt.s32.totalorder %v1137_v15, 17 }
  0x17   : > { %496 = vrot.lane.b32.xlu1 %v1031_v1, %s969_s22  ;;  %539 = vrot.lane.b32.xlu0 %v1031_v1, %s970_s23 }
  0x18   : > { %453 = vrot.lane.b32.xlu2 %v1031_v1, %s971_s24 }
  0x1f   : > { %537 = vrot.lane.b32.xlu1 %v1040_v2, %s970_s23  ;;  %529 = vrot.lane.b32.xlu0 %v1043_v3, %s970_s23 }
  0x20   : > { %402 = vrot.lane.b32.xlu2 %v1022_v0, %s972_s25 }
  0x27   : > { %486 = vrot.lane.b32.xlu1 %v1043_v3, %s969_s22  ;;  %410 = vrot.lane.b32.xlu0 %v1031_v1, %s972_s25 }
  0x28   : > { %494 = vrot.lane.b32.xlu2 %v1040_v2, %s969_s22 }
  0x2f   : > { %543 = vrot.lane.b32.xlu1 %v1058_v4, %s970_s23  ;;  %535 = vrot.lane.b32.xlu0 %v1061_v5, %s970_s23 }
  0x30   : > { %443 = vrot.lane.b32.xlu2 %v1043_v3, %s971_s24 }
  0x37   : > { %351 = vrot.lane.b32.xlu1 %v1022_v0, %s973_s26  ;;  %451 = vrot.lane.b32.xlu0 %v1040_v2, %s971_s24 }
  0x38   : > { %359 = vrot.lane.b32.xlu2 %v1031_v1, %s973_s26 }
  0x3f   : > { %500 = vrot.lane.b32.xlu1 %v1058_v4, %s969_s22  ;;  %492 = vrot.lane.b32.xlu0 %v1061_v5, %s969_s22 }
  0x40   : > { %400 = vrot.lane.b32.xlu2 %v1043_v3, %s972_s25 }
  0x47   : > { %308 = vrot.lane.b32.xlu1 %v1022_v0, %s974_s27  ;;  %408 = vrot.lane.b32.xlu0 %v1040_v2, %s972_s25 }
  0x48   : > { %316 = vrot.lane.b32.xlu2 %v1031_v1, %s974_s27 }
  0x4f   : > { %457 = vrot.lane.b32.xlu1 %v1058_v4, %s971_s24  ;;  %449 = vrot.lane.b32.xlu0 %v1061_v5, %s971_s24 }
  0x50   : > { %533 = vrot.lane.b32.xlu2 %v1092_v6, %s970_s23 }
  0x57   : > { %265 = vrot.lane.b32.xlu1 %v1022_v0, %s975_s28  ;;  %541 = vrot.lane.b32.xlu0 %v1097_v7, %s970_s23 }
  0x58   : > { %273 = vrot.lane.b32.xlu2 %v1031_v1, %s975_s28 }
  0x5f   : > { %414 = vrot.lane.b32.xlu1 %v1058_v4, %s972_s25  ;;  %406 = vrot.lane.b32.xlu0 %v1061_v5, %s972_s25 }
  0x60   : > { %349 = vrot.lane.b32.xlu2 %v1043_v3, %s973_s26 }
  0x67   : > { %490 = vrot.lane.b32.xlu1 %v1092_v6, %s969_s22  ;;  %357 = vrot.lane.b32.xlu0 %v1040_v2, %s973_s26 }
  0x68   : > { %498 = vrot.lane.b32.xlu2 %v1097_v7, %s969_s22 }
  0x6a   : > { %v446_v8 = vpop.permute.xlu2 %445 }
  0x6f   : > { %228 = vrot.lane.b32.xlu1 %v1031_v1, %s976_s29  ;;  %220 = vrot.lane.b32.xlu0 %v1022_v0, %s976_s29 }
  0x70   : > { %306 = vrot.lane.b32.xlu2 %v1043_v3, %s974_s27 }
  0x72   : > { %v454_v9 = vpop.permute.xlu2 %453 }
  0x73   : > { %v461_v33 = vsel %vm459_vm2, %v446_v8, %v454_v9  ;;  %v465_v34 = vsel %vm459_vm2, %v454_v9, %v446_v8  ;;  %v1259_v8 = vperm.slane %v1142_v16, 3  ;;  %v1262_v9 = vperm.slane %v1147_v17, 3 }
  0x74   : > { %v472_v37 = vmul.f32 %v1187_v31, %v461_v33  ;;  %v473_v38 = vmul.f32 %v1190_v32, %v465_v34  ;;  %v1296_v33 = vperm.slane %v1142_v16, 2  ;;  %v1299_v34 = vperm.slane %v1147_v17, 2 }
  0x77   : > { %447 = vrot.lane.b32.xlu1 %v1092_v6, %s971_s24  ;;  %314 = vrot.lane.b32.xlu0 %v1040_v2, %s974_s27 }
  0x78   : > { %455 = vrot.lane.b32.xlu2 %v1097_v7, %s971_s24 }
  0x7a   : > { %v1129_v10 = vpop.permute.xlu2 %402 }
  0x7f   : > { %363 = vrot.lane.b32.xlu1 %v1058_v4, %s973_s26  ;;  %355 = vrot.lane.b32.xlu0 %v1061_v5, %s973_s26 }
  0x80   : > { %263 = vrot.lane.b32.xlu2 %v1043_v3, %s975_s28 }
  0x81   : > { %v489_v12 = vpop.permute.xlu1 %488  ;;  %v532_v13 = vpop.permute.xlu0 %531 }
  0x82   : > { %v495_v14 = vpop.permute.xlu2 %494 }
  0x87   : > { %404 = vrot.lane.b32.xlu1 %v1092_v6, %s972_s25  ;;  %271 = vrot.lane.b32.xlu0 %v1040_v2, %s975_s28 }
  0x88   : > { %412 = vrot.lane.b32.xlu2 %v1097_v7, %s972_s25 }
  0x89   : > { %v497_v20 = vpop.permute.xlu1 %496  ;;  %v540_v21 = vpop.permute.xlu0 %539 }
  0x8a   : > { %v504_v24 = vsel %vm502_vm0, %v489_v12, %v497_v20  ;;  %v508_v25 = vsel %vm502_vm0, %v497_v20, %v489_v12  ;;  %v547_v26 = vsel %vm545_vm1, %v532_v13, %v540_v21  ;;  %v551_v27 = vsel %vm545_vm1, %v540_v21, %v532_v13  ;;  %v1182_v28 = vpop.permute.xlu2 %443 }
  0x8b   : > { %v558_v29 = vmul.f32 %v1158_v18, %v547_v26  ;;  %v559_v30 = vmul.f32 %v1163_v19, %v551_v27  ;;  %v515_v35 = vmul.f32 %v1169_v22, %v504_v24  ;;  %v516_v36 = vmul.f32 %v1172_v23, %v508_v25 }
  0x8d   : > { %671 = vmatpush.msra.mxu2 %v558_v29  ;;  %691 = vmatpush.msra.mxu3 %v559_v30 }
  0x8f   : > { %672 = vmatpush.msra.mxu2 %v515_v35  ;;  %692 = vmatpush.msra.mxu3 %v516_v36 }
  0x90   : > { %320 = vrot.lane.b32.xlu1 %v1058_v4, %s974_s27  ;;  %312 = vrot.lane.b32.xlu0 %v1061_v5, %s974_s27 }
  0x91   : > { %673 = vmatpush.msra.mxu2 %v472_v37  ;;  %693 = vmatpush.msra.mxu3 %v473_v38  ;;  %v538_v39 = vpop.permute.xlu1 %537  ;;  %v530_v40 = vpop.permute.xlu0 %529 }
  0x92   : > { %v546_v41 = vsel %vm545_vm1, %v530_v40, %v538_v39  ;;  %v550_v42 = vsel %vm545_vm1, %v538_v39, %v530_v40  ;;  %218 = vrot.lane.b32.xlu2 %v1043_v3, %s976_s29  ;;  %v360_v43 = vpop.permute.xlu2 %359 }
  0x93   : > { %v556_v44 = vmul.f32 %v1158_v18, %v546_v41  ;;  %v557_v45 = vmul.f32 %v1163_v19, %v550_v42 }
  0x95   : > { %608 = vmatpush.msra.mxu0 %v556_v44  ;;  %628 = vmatpush.msra.mxu1 %v557_v45 }
  0x98   : > { %269 = vrot.lane.b32.xlu1 %v1061_v5, %s975_s28  ;;  %226 = vrot.lane.b32.xlu0 %v1040_v2, %s976_s29 }
  0x99   : > { %v487_v48 = vpop.permute.xlu1 %486  ;;  %v411_v49 = vpop.permute.xlu0 %410 }
  0x9a   : > { %v418_v50 = vsel %vm416_vm3, %v1129_v10, %v411_v49  ;;  %v422_v51 = vsel %vm416_vm3, %v411_v49, %v1129_v10  ;;  %v503_v52 = vsel %vm502_vm0, %v487_v48, %v495_v14  ;;  %v507_v53 = vsel %vm502_vm0, %v495_v14, %v487_v48  ;;  %277 = vrot.lane.b32.xlu2 %v1058_v4, %s975_s28  ;;  %v401_v54 = vpop.permute.xlu2 %400 }
  0x9b   : > { %v429_v55 = vmul.f32 %v1214_v46, %v418_v50  ;;  %v430_v56 = vmul.f32 %v1217_v47, %v422_v51  ;;  %v513_v57 = vmul.f32 %v1169_v22, %v503_v52  ;;  %v514_v58 = vmul.f32 %v1172_v23, %v507_v53 }
  0x9c   : > { %v1319_v50 = vperm.slane %v1142_v16, 1  ;;  %v1322_v51 = vperm.slane %v1147_v17, 1 }
  0x9d   : > { %674 = vmatpush.msra.mxu2 %v429_v55  ;;  %694 = vmatpush.msra.mxu3 %v430_v56 }
  0x9e   : > { %609 = vmatpush.msra.mxu0 %v513_v57  ;;  %629 = vmatpush.msra.mxu1 %v514_v58 }
  0x9f   : > { %675 = vmatpush.msra.mxu2 %v1022_v0  ;;  %695 = vmatpush.msra.mxu3 %v1031_v1 }
  0xa0   : > { %361 = vrot.lane.b32.xlu1 %v1097_v7, %s973_s26  ;;  %353 = vrot.lane.b32.xlu0 %v1092_v6, %s973_s26 }
  0xa1   : > { %v544_v59 = vpop.permute.xlu1 %543  ;;  %v536_v60 = vpop.permute.xlu0 %535 }
  0xa2   : > { %v549_v61 = vsel %vm545_vm1, %v536_v60, %v544_v59  ;;  %v553_v62 = vsel %vm545_vm1, %v544_v59, %v536_v60  ;;  %224 = vrot.lane.b32.xlu2 %v1061_v5, %s976_s29  ;;  %v317_v63 = vpop.permute.xlu2 %316 }
  0xa3   : > { %v1252_v0 = vmul.f32 %v1158_v18, %v549_v61  ;;  %v1255_v1 = vmul.f32 %v1163_v19, %v553_v62 }
  0xa8   : > { %310 = vrot.lane.b32.xlu1 %v1092_v6, %s974_s27  ;;  %232 = vrot.lane.b32.xlu0 %v1058_v4, %s976_s29 }
  0xa9   : > { %v352_v10 = vpop.permute.xlu1 %351  ;;  %v452_v11 = vpop.permute.xlu0 %451 }
  0xaa   : > { %v460_v12 = vsel %vm459_vm2, %v1182_v28, %v452_v11  ;;  %v464_v13 = vsel %vm459_vm2, %v452_v11, %v1182_v28  ;;  %v367_v14 = vsel %vm365_vm4, %v352_v10, %v360_v43  ;;  %v371_v20 = vsel %vm365_vm4, %v360_v43, %v352_v10  ;;  %318 = vrot.lane.b32.xlu2 %v1097_v7, %s974_s27  ;;  %v534_v21 = vpop.permute.xlu2 %533 }
  0xab   : > { %v470_v24 = vmul.f32 %v1187_v31, %v460_v12  ;;  %v471_v25 = vmul.f32 %v1190_v32, %v464_v13  ;;  %v378_v26 = vmul.f32 %v1259_v8, %v371_v20  ;;  %v379_v27 = vmul.f32 %v1262_v9, %v367_v14 }
  0xac   : > { %v1354_v20 = vperm.slane %v1142_v16, 0 }
  0xad   : > { %610 = vmatpush.msra.mxu0 %v470_v24  ;;  %630 = vmatpush.msra.mxu1 %v471_v25 }
  0xae   : > { %676 = vmatpush.msra.mxu2 %v378_v26  ;;  %696 = vmatpush.msra.mxu3 %v379_v27 }
  0xb0   : > { %275 = vrot.lane.b32.xlu1 %v1097_v7, %s975_s28  ;;  %267 = vrot.lane.b32.xlu0 %v1092_v6, %s975_s28 }
  0xb1   : > { %v1288_v28 = vpop.permute.xlu1 %500  ;;  %v1290_v29 = vpop.permute.xlu0 %492 }
  0xb2   : > { %222 = vrot.lane.b32.xlu2 %v1092_v6, %s976_s29  ;;  %v274_v30 = vpop.permute.xlu2 %273  ;;  %v510_v16 = vsel %vm502_vm0, %v1288_v28, %v1290_v29 }
  0xb8   : > { %230 = vrot.lane.b32.xlu0 %v1097_v7, %s976_s29 }
  0xb9   : > { %v309_v35 = vpop.permute.xlu1 %308  ;;  %v409_v36 = vpop.permute.xlu0 %408 }
  0xba   : > { %v417_v37 = vsel %vm416_vm3, %v401_v54, %v409_v36  ;;  %v421_v38 = vsel %vm416_vm3, %v409_v36, %v401_v54  ;;  %v324_v39 = vsel %vm322_vm5, %v309_v35, %v317_v63  ;;  %v328_v40 = vsel %vm322_vm5, %v317_v63, %v309_v35  ;;  %v350_v45 = vpop.permute.xlu2 %349 }
  0xbb   : > { %v427_v41 = vmul.f32 %v1214_v46, %v417_v37  ;;  %v428_v42 = vmul.f32 %v1217_v47, %v421_v38  ;;  %v335_v43 = vmul.f32 %v1296_v33, %v328_v40  ;;  %v336_v44 = vmul.f32 %v1299_v34, %v324_v39 }
  0xbd   : > { %611 = vmatpush.msra.mxu0 %v427_v41  ;;  %631 = vmatpush.msra.mxu1 %v428_v42 }
  0xbe   : > { %677 = vmatpush.msra.mxu2 %v335_v43  ;;  %697 = vmatpush.msra.mxu3 %v336_v44 }
  0xbf   : > { %612 = vmatpush.msra.mxu0 %v1043_v3  ;;  %632 = vmatpush.msra.mxu1 %v1040_v2 }
  0xc1   : > { %v458_v48 = vpop.permute.xlu1 %457  ;;  %v450_v49 = vpop.permute.xlu0 %449 }
  0xc2   : > { %v1324_v52 = vpop.permute.xlu2 %498  ;;  %v463_v36 = vsel %vm459_vm2, %v450_v49, %v458_v48  ;;  %v467_v37 = vsel %vm459_vm2, %v458_v48, %v450_v49 }
  0xc3   : > { %v476_v41 = vmul.f32 %v1187_v31, %v463_v36  ;;  %v477_v42 = vmul.f32 %v1190_v32, %v467_v37 }
  0xc9   : > { %v266_v53 = vpop.permute.xlu1 %265  ;;  %v542_v54 = vpop.permute.xlu0 %541 }
  0xca   : > { %v548_v55 = vsel %vm545_vm1, %v534_v21, %v542_v54  ;;  %v552_v2 = vsel %vm545_vm1, %v542_v54, %v534_v21  ;;  %v281_v3 = vsel %vm279_vm6, %v266_v53, %v274_v30  ;;  %v285_v56 = vsel %vm279_vm6, %v274_v30, %v266_v53  ;;  %v307_v63 = vpop.permute.xlu2 %306 }
  0xcb   : > { %v292_v57 = vmul.f32 %v1319_v50, %v285_v56  ;;  %v293_v58 = vmul.f32 %v1322_v51, %v281_v3  ;;  %v1337_v59 = vmul.f32 %v1158_v18, %v548_v55  ;;  %v1340_v60 = vmul.f32 %v1163_v19, %v552_v2 }
  0xcc   : > { %v1357_v21 = vperm.slane %v1147_v17, 0  ;;  %v506_v30 = vsel %vm502_vm0, %v1290_v29, %v1288_v28  ;;  %v520_v29 = vmul.f32 %v1172_v23, %v510_v16 }
  0xcd   : > { %678 = vmatpush.msra.mxu2 %v292_v57  ;;  %698 = vmatpush.msra.mxu3 %v293_v58  ;;  %v519_v28 = vmul.f32 %v1169_v22, %v506_v30 }
  0xd1   : > { %v415_v61 = vpop.permute.xlu1 %414  ;;  %v407_v62 = vpop.permute.xlu0 %406 }
  0xd2   : > { %v1350_v19 = vpop.permute.xlu2 %455  ;;  %v420_v38 = vsel %vm416_vm3, %v407_v62, %v415_v61  ;;  %v424_v40 = vsel %vm416_vm3, %v415_v61, %v407_v62 }
  0xd3   : > { %v434_v48 = vmul.f32 %v1217_v47, %v424_v40 }
  0xd9   : > { %v1342_v10 = vpop.permute.xlu1 %490  ;;  %v358_v11 = vpop.permute.xlu0 %357 }
  0xda   : > { %v366_v12 = vsel %vm365_vm4, %v350_v45, %v358_v11  ;;  %v370_v13 = vsel %vm365_vm4, %v358_v11, %v350_v45  ;;  %v264_v39 = vpop.permute.xlu2 %263  ;;  %v505_v16 = vsel %vm502_vm0, %v1342_v10, %v1324_v52 }
  0xdb   : > { %v376_v18 = vmul.f32 %v1259_v8, %v370_v13  ;;  %v377_v14 = vmul.f32 %v1262_v9, %v366_v12  ;;  %v1412_v13 = vld [vmem:[%s1518_s1] sm:$0xff] }
  0xdd   : > { %613 = vmatpush.msra.mxu0 %v376_v18  ;;  %633 = vmatpush.msra.mxu1 %v377_v14 }
  0xe1   : > { %v229_v24 = vpop.permute.xlu1 %228  ;;  %v221_v25 = vpop.permute.xlu0 %220 }
  0xe2   : > { %v238_v26 = vsel %vm236_vm7, %v221_v25, %v229_v24  ;;  %v242_v27 = vsel %vm236_vm7, %v229_v24, %v221_v25  ;;  %v413_v54 = vpop.permute.xlu2 %412 }
  0xe3   : > { %v249_v17 = vmul.f32 %v1354_v20, %v242_v27  ;;  %v250_v35 = vmul.f32 %v1357_v21, %v238_v26 }
  0xe5   : > { %679 = vmatpush.msra.mxu2 %v249_v17  ;;  %699 = vmatpush.msra.mxu3 %v250_v35  ;;  %v509_v17 = vsel %vm502_vm0, %v1324_v52, %v1342_v10 }
  0xe6   : > { %908 = vmatmul.msk.f32.vlgmr.msra.gmra.mxu2 %vm597_vm8, %v1412_v13  ;;  %909 = vmatmul.msk.f32.vlgmr.msra.gmra.mxu3 %vm597_vm8, %v1412_v13 }
  0xe7   : > { %799 = vmatpush.msrb.mxu2 %v1252_v0  ;;  %819 = vmatpush.msrb.mxu3 %v1255_v1  ;;  %v433_v0 = vmul.f32 %v1214_v46, %v420_v38 }
  0xe9   : > { %800 = vmatpush.msrb.mxu2 %v519_v28  ;;  %820 = vmatpush.msrb.mxu3 %v520_v29  ;;  %v448_v43 = vpop.permute.xlu1 %447  ;;  %v315_v44 = vpop.permute.xlu0 %314 }
  0xea   : > { %v323_v1 = vsel %vm322_vm5, %v307_v63, %v315_v44  ;;  %v327_v45 = vsel %vm322_vm5, %v315_v44, %v307_v63 }
  0xeb   : > { %801 = vmatpush.msrb.mxu2 %v476_v41  ;;  %821 = vmatpush.msrb.mxu3 %v477_v42  ;;  %v333_v49 = vmul.f32 %v1296_v33, %v327_v45  ;;  %v334_v53 = vmul.f32 %v1299_v34, %v323_v1  ;;  %v462_v41 = vsel %vm459_vm2, %v448_v43, %v1350_v19 }
  0xec   : > { %v219_v63 = vpop.permute.xlu2 %218  ;;  %v466_v42 = vsel %vm459_vm2, %v1350_v19, %v448_v43  ;;  %v518_v1 = vmul.f32 %v1172_v23, %v509_v17  ;;  %v474_v19 = vmul.f32 %v1187_v31, %v462_v41  ;;  %v573_v31 = vld [vmem:[%s1519_s2] sm:$0xff] }
  0xed   : > { %802 = vmatpush.msrb.mxu2 %v433_v0  ;;  %822 = vmatpush.msrb.mxu3 %v434_v48  ;;  %v517_v0 = vmul.f32 %v1169_v22, %v505_v16 }
  0xee   : > { %614 = vmatpush.msra.mxu0 %v333_v49  ;;  %634 = vmatpush.msra.mxu1 %v334_v53  ;;  %v977_v53 = vmov 0  }
  0xef   : > { %803 = vmatpush.msrb.mxu2 %v1061_v5  ;;  %823 = vmatpush.msrb.mxu3 %v1058_v4 }
  0xf0   : > { %941 = vset.pattern.permute.xlu1 %v977_v53  ;;  %942 = vset.pattern.permute.xlu0 %v977_v53 }
  0xf1   : > { %v364_v55 = vpop.permute.xlu1 %363  ;;  %v356_v2 = vpop.permute.xlu0 %355  ;;  %594 = vperm.xlu1 %941, %v573_v31  }
  0xf2   : > { %v369_v3 = vsel %vm365_vm4, %v356_v2, %v364_v55  ;;  %v373_v56 = vsel %vm365_vm4, %v364_v55, %v356_v2 }
  0xf3   : > { %v382_v57 = vmul.f32 %v1259_v8, %v373_v56  ;;  %v383_v58 = vmul.f32 %v1262_v9, %v369_v3 }
  0xf4   : > { %v278_v30 = vpop.permute.xlu2 %277 }
  0xf5   : > { %804 = vmatpush.msrb.mxu2 %v382_v57  ;;  %824 = vmatpush.msrb.mxu3 %v383_v58 }
  0xf9   : > { %v405_v61 = vpop.permute.xlu1 %404  ;;  %v272_v62 = vpop.permute.xlu0 %271 }
  0xfa   : > { %v280_v4 = vsel %vm279_vm6, %v264_v39, %v272_v62  ;;  %v284_v5 = vsel %vm279_vm6, %v272_v62, %v264_v39  ;;  %v419_v45 = vsel %vm416_vm3, %v405_v61, %v413_v54  ;;  %v423_v48 = vsel %vm416_vm3, %v413_v54, %v405_v61 }
  0xfb   : > { %v290_v11 = vmul.f32 %v1319_v50, %v284_v5  ;;  %v291_v12 = vmul.f32 %v1322_v51, %v280_v4  ;;  %v431_v22 = vmul.f32 %v1214_v46, %v419_v45  ;;  %v432_v23 = vmul.f32 %v1217_v47, %v423_v48 }
  0xfc   : > { %v225_v44 = vpop.permute.xlu2 %224 }
  0xfd   : > { %615 = vmatpush.msra.mxu0 %v290_v11  ;;  %635 = vmatpush.msra.mxu1 %v291_v12 }
 0x102   : > { %v321_v18 = vpop.permute.xlu1 %320  ;;  %v313_v14 = vpop.permute.xlu0 %312 }
 0x103   : > { %v326_v24 = vsel %vm322_vm5, %v313_v14, %v321_v18  ;;  %v330_v25 = vsel %vm322_vm5, %v321_v18, %v313_v14 }
 0x104   : > { %v339_v26 = vmul.f32 %v1296_v33, %v330_v25  ;;  %v340_v27 = vmul.f32 %v1299_v34, %v326_v24  ;;  %v319_v54 = vpop.permute.xlu2 %318 }
 0x106   : > { %805 = vmatpush.msrb.mxu2 %v339_v26  ;;  %825 = vmatpush.msrb.mxu3 %v340_v27 }
 0x10a   : > { %v270_v35 = vpop.permute.xlu1 %269  ;;  %v227_v36 = vpop.permute.xlu0 %226 }
 0x10b   : > { %v237_v37 = vsel %vm236_vm7, %v219_v63, %v227_v36  ;;  %v241_v38 = vsel %vm236_vm7, %v227_v36, %v219_v63  ;;  %v283_v28 = vsel %vm279_vm6, %v270_v35, %v278_v30  ;;  %v287_v29 = vsel %vm279_vm6, %v278_v30, %v270_v35 }
 0x10c   : > { %v247_v39 = vmul.f32 %v1354_v20, %v241_v38  ;;  %v248_v40 = vmul.f32 %v1357_v21, %v237_v37  ;;  %v296_v52 = vmul.f32 %v1319_v50, %v287_v29  ;;  %v297_v10 = vmul.f32 %v1322_v51, %v283_v28  ;;  %v223_v63 = vpop.permute.xlu2 %222 }
 0x10e   : > { %616 = vmatpush.msra.mxu0 %v247_v39  ;;  %636 = vmatpush.msra.mxu1 %v248_v40 }
 0x10f   : > { %806 = vmatpush.msrb.mxu2 %v296_v52  ;;  %826 = vmatpush.msrb.mxu3 %v297_v10 }
 0x110   : > { %735 = vmatpush.msrb.mxu0 %v1337_v59  ;;  %755 = vmatpush.msrb.mxu1 %v1340_v60  ;;  %v475_v59 = vmul.f32 %v1190_v32, %v466_v42 }
 0x111   : > { %906 = vmatmul.msk.f32.vlgmr.msra.gmra.mxu0 %vm597_vm8, %v1412_v13  ;;  %907 = vmatmul.msk.f32.vlgmr.msra.gmra.mxu1 %vm597_vm8, %v1412_v13 }
 0x112   : > { %736 = vmatpush.msrb.mxu0 %v517_v0  ;;  %756 = vmatpush.msrb.mxu1 %v518_v1  ;;  %v362_v43 = vpop.permute.xlu1 %361  ;;  %v354_v60 = vpop.permute.xlu0 %353 }
 0x113   : > { %v368_v32 = vsel %vm365_vm4, %v354_v60, %v362_v43  ;;  %v372_v49 = vsel %vm365_vm4, %v362_v43, %v354_v60 }
 0x114   : > { %737 = vmatpush.msrb.mxu0 %v474_v19  ;;  %757 = vmatpush.msrb.mxu1 %v475_v59  ;;  %v380_v46 = vmul.f32 %v1259_v8, %v372_v49  ;;  %v381_v47 = vmul.f32 %v1262_v9, %v368_v32 }
 0x116   : > { %738 = vmatpush.msrb.mxu0 %v431_v22  ;;  %758 = vmatpush.msrb.mxu1 %v432_v23 }
 0x118   : > { %739 = vmatpush.msrb.mxu0 %v1092_v6  ;;  %759 = vmatpush.msrb.mxu1 %v1097_v7 }
 0x11a   : > { %740 = vmatpush.msrb.mxu0 %v380_v46  ;;  %760 = vmatpush.msrb.mxu1 %v381_v47  ;;  %v311_v55 = vpop.permute.xlu1 %310  ;;  %v233_v2 = vpop.permute.xlu0 %232 }
 0x11b   : > { %v240_v3 = vsel %vm236_vm7, %v225_v44, %v233_v2  ;;  %v244_v56 = vsel %vm236_vm7, %v233_v2, %v225_v44  ;;  %v325_v6 = vsel %vm322_vm5, %v311_v55, %v319_v54  ;;  %v329_v7 = vsel %vm322_vm5, %v319_v54, %v311_v55 }
 0x11c   : > { %v253_v8 = vmul.f32 %v1354_v20, %v244_v56  ;;  %v254_v9 = vmul.f32 %v1357_v21, %v240_v3  ;;  %v337_v57 = vmul.f32 %v1296_v33, %v329_v7  ;;  %v338_v58 = vmul.f32 %v1299_v34, %v325_v6 }
 0x11e   : > { %807 = vmatpush.msrb.mxu2 %v253_v8  ;;  %827 = vmatpush.msrb.mxu3 %v254_v9 }
 0x11f   : > { %741 = vmatpush.msrb.mxu0 %v337_v57  ;;  %761 = vmatpush.msrb.mxu1 %v338_v58 }
 0x120   : > { %916 = vmatmul.msk.f32.vlgmr.msrb.gmra.mxu2 %vm597_vm8, %v1412_v13  ;;  %917 = vmatmul.msk.f32.vlgmr.msrb.gmra.mxu3 %vm597_vm8, %v1412_v13 }
 0x122   : > { %v276_v61 = vpop.permute.xlu1 %275  ;;  %v268_v62 = vpop.permute.xlu0 %267 }
 0x123   : > { %v282_v4 = vsel %vm279_vm6, %v268_v62, %v276_v61  ;;  %v286_v33 = vsel %vm279_vm6, %v276_v61, %v268_v62 }
 0x124   : > { %v294_v34 = vmul.f32 %v1319_v50, %v286_v33  ;;  %v295_v5 = vmul.f32 %v1322_v51, %v282_v4 }
 0x126   : > { %742 = vmatpush.msrb.mxu0 %v294_v34  ;;  %762 = vmatpush.msrb.mxu1 %v295_v5 }
 0x12a   : > { %v231_v11 = vpop.permute.xlu0 %230 }
 0x12b   : > { %v239_v12 = vsel %vm236_vm7, %v223_v63, %v231_v11  ;;  %v243_v18 = vsel %vm236_vm7, %v231_v11, %v223_v63 }
 0x12c   : > { %v251_v14 = vmul.f32 %v1354_v20, %v243_v18  ;;  %v252_v24 = vmul.f32 %v1357_v21, %v239_v12 }
 0x12e   : > { %743 = vmatpush.msrb.mxu0 %v251_v14  ;;  %763 = vmatpush.msrb.mxu1 %v252_v24 }
 0x12f   : > { %912 = vmatmul.msk.f32.vlgmr.msrb.gmra.mxu0 %vm597_vm8, %v1412_v13  ;;  %913 = vmatmul.msk.f32.vlgmr.msrb.gmra.mxu1 %vm597_vm8, %v1412_v13 }
 0x163   : > { %v595_v50 = vpop.permute.xlu1 %594 }
 0x169   : > { %v681_v51 = vpop.f32.mrf.mxu2  ;;  %v701_v25 = vpop.f32.mrf.mxu3 }
 0x16a   : > { %v682_v26 = vadd.f32 %v681_v51, %v595_v50  ;;  %v702_v27 = vadd.f32 %v701_v25, %v595_v50 }
 0x16c   : > { %945 = vtanh.f32 %v682_v26 }
 0x16d   : > { %947 = vtanh.f32 %v702_v27 }
 0x172   : > { %v946_v21 = vpop.eup %945 }
 0x173   : > { %v948_v13 = vpop.eup %947  ;;  %910 = vst [vmem:[%s204_s21 + $0x10] sm:$0xff] %v946_v21 }
 0x174   : > { %911 = vst [vmem:[%s204_s21 + $0x18] sm:$0xff] %v948_v13 }
 0x18e   : > { %v618_v15 = vpop.f32.mrf.mxu0  ;;  %v638_v30 = vpop.f32.mrf.mxu1 }
 0x18f   : > { %v619_v20 = vadd.f32 %v618_v15, %v595_v50  ;;  %v639_v16 = vadd.f32 %v638_v30, %v595_v50 }
 0x191   : > { %949 = vtanh.f32 %v619_v20 }
 0x192   : > { %951 = vtanh.f32 %v639_v16 }
 0x197   : > { %v950_v17 = vpop.eup %949 }
 0x198   : > { %v952_v35 = vpop.eup %951  ;;  %643 = vst [vmem:[%s204_s21] sm:$0xff] %v950_v17 }
 0x199   : > { %644 = vst [vmem:[%s204_s21 + $0x8] sm:$0xff] %v952_v35 }
 0x1a3   : > { %v809_v36 = vpop.f32.mrf.mxu2  ;;  %v829_v38 = vpop.f32.mrf.mxu3 }
 0x1a4   : > { %v810_v37 = vadd.f32 %v809_v36, %v595_v50  ;;  %v830_v52 = vadd.f32 %v829_v38, %v595_v50 }
 0x1a6   : > { %953 = vtanh.f32 %v810_v37 }
 0x1ac   : > { %v745_v28 = vpop.f32.mrf.mxu0  ;;  %v765_v29 = vpop.f32.mrf.mxu1 }
 0x1ad   : > { %v746_v39 = vadd.f32 %v745_v28, %v595_v50  ;;  %v766_v40 = vadd.f32 %v765_v29, %v595_v50  ;;  %v954_v10 = vpop.eup %953 }
 0x1ae   : > { %918 = vst [vmem:[%s204_s21 + $0x30] sm:$0xff] %v954_v10 }
 0x1af   : > { %955 = vtanh.f32 %v746_v39 }
 0x1b0   : > { %957 = vtanh.f32 %v766_v40 }
 0x1b1   : > { %959 = vtanh.f32 %v830_v52 }
 0x1b5   : > { %v956_v41 = vpop.eup %955 }
 0x1b6   : > { %v958_v42 = vpop.eup %957  ;;  %914 = vst [vmem:[%s204_s21 + $0x20] sm:$0xff] %v956_v41 }
 0x1b7   : > { %v960_v44 = vpop.eup %959  ;;  %915 = vst [vmem:[%s204_s21 + $0x28] sm:$0xff] %v958_v42 }
 0x1b8   : > { %919 = vst [vmem:[%s204_s21 + $0x38] sm:$0xff] %v960_v44 }
 0x1b9 PF: > { %s14_s15 = sadd.s32 1, %s967_s15  }
 0x1ba   : > { %p11_p4 = scmp.ge.s32.totalorder %s14_s15, 4  }
 0x1bc   :  { %13 = sbr.rel (!%p11_p4) target bundleno = 1 (0x1), region = 72 }

</bundles_post_ra>
